<compile_context>
chip_gen: v7x
topology: tpu7x:2x2x1
jax: 0.10.0
libtpu: 0.0.40
codegen_flags: <defaults>
</compile_context>

<pallas_src>
import functools

import jax
import jax.numpy as jnp
from jax.experimental import pallas as pl
from jax.experimental.pallas import tpu as pltpu


def _round_up(n, m):
    return ((n + m - 1) // m) * m


def _pad_axis(a, axis, target):
    pad = target - a.shape[axis]
    if pad == 0:
        return a
    widths = [(0, 0)] * a.ndim
    widths[axis] = (0, pad)
    return jnp.pad(a, widths)


def _cmix_kernel(x_ref, bnd_ref, maak_ref, maar_ref, wk_ref, wv_ref, wr_ref,
                 out_ref, xk_buf, xr_buf, kv_acc):
    f = pl.program_id(1)
    nf = pl.num_programs(1)
    bsz, tt, cp = x_ref.shape
    rows = bsz * tt

    # ---- once per time-tile: token shift + data-dependent mixing ------------
    @pl.when(f == 0)
    def _():
        x3 = x_ref[...].astype(jnp.float32)                       # (B, tt, Cp)
        # xprev[b, t] = x[b, t-1] via an XLU sublane roll on the flattened rows.
        # The wrapped row of each batch (t == 0) is replaced by the per-batch
        # boundary row below, so rolling across batch boundaries is harmless.
        xprev = pltpu.roll(x3.reshape(rows, cp), shift=1, axis=0)
        xprev = xprev.reshape(bsz, tt, cp)
        t_idx = jax.lax.broadcasted_iota(jnp.int32, (bsz, tt, cp), 1)
        xprev = jnp.where(t_idx == 0, bnd_ref[...].astype(jnp.float32), xprev)

        x2 = x3.reshape(rows, cp)
        dx = xprev.reshape(rows, cp) - x2
        xk_buf[...] = (x2 + dx * maak_ref[...]).astype(xk_buf.dtype)
        xr_buf[...] = (x2 + dx * maar_ref[...]).astype(xr_buf.dtype)
        kv_acc[...] = jnp.zeros_like(kv_acc)

    # ---- per ffn-tile: k = relu(xk @ Wk)^2 ; kv += k @ Wv --------------------
    k = jnp.dot(xk_buf[...], wk_ref[...], preferred_element_type=jnp.float32)
    k = jnp.maximum(k, 0.0)
    k = k * k                                                     # squared in f32
    kv_acc[...] += jnp.dot(k.astype(wv_ref.dtype), wv_ref[...],
                           preferred_element_type=jnp.float32)

    # ---- finalize: receptance gate and writeback -----------------------------
    @pl.when(f == nf - 1)
    def _():
        r = jax.nn.sigmoid(jnp.dot(xr_buf[...], wr_ref[...],
                                   preferred_element_type=jnp.float32))
        out = r * kv_acc[...]
        out_ref[...] = out.reshape(out_ref.shape).astype(out_ref.dtype)


def prepare_cmix_params(time_maa_k, time_maa_r, w_key, w_receptance, w_value,
                        *, tile_f=1024, param_dtype=jnp.bfloat16):
    """One-time (model-load) padding + cast of the static CMix_x060 parameters.

    w_key:        (C, F)  -- key.weight.T         (so that y = x @ W)
    w_receptance: (C, C)  -- receptance.weight.T
    w_value:      (F, C)  -- value.weight.T
    """
    C, F = w_key.shape
    Cp = _round_up(C, 128)
    tf = min(_round_up(tile_f, 128), _round_up(F, 128))
    Fp = _round_up(F, tf)
    return dict(
        maak=_pad_axis(jnp.reshape(time_maa_k, (1, -1)), 1, Cp).astype(jnp.float32),
        maar=_pad_axis(jnp.reshape(time_maa_r, (1, -1)), 1, Cp).astype(jnp.float32),
        wk=_pad_axis(_pad_axis(w_key, 0, Cp), 1, Fp).astype(param_dtype),
        wv=_pad_axis(_pad_axis(w_value, 0, Fp), 1, Cp).astype(param_dtype),
        wr=_pad_axis(_pad_axis(w_receptance, 0, Cp), 1, Cp).astype(param_dtype),
    )


@functools.partial(jax.jit,
                   static_argnames=("tile_t", "tile_f", "wr_resident"))
def cmix_x060_forward(x, shift_state, maak, maar, wk, wv, wr,
                      *, tile_t=256, tile_f=1024, wr_resident=True):
    """Returns (out, new_shift_state).

    x:           (B, T, C)
    shift_state: (B, C)     -- last_state.shift_state
    maak/maar/wk/wv/wr:     -- outputs of prepare_cmix_params().
    """
    B, T, C = x.shape
    Cp, Fp = wk.shape
    assert Cp % 128 == 0 and Cp >= C
    out_dtype = x.dtype
    cdt = wk.dtype

    # ---- static tiling --------------------------------------------------------
    # tile_t: multiple of 8, clamped to the (8-padded) sequence length.
    tile_t = max(8, min(_round_up(tile_t, 8), _round_up(T, 8)))
    NT = pl.cdiv(T, tile_t)
    Tp = NT * tile_t
    tf = min(_round_up(tile_f, 128), Fp)
    while Fp % tf != 0:                      # keep the reduction grid exact
        tf -= 128
    NF = Fp // tf
    rows = B * tile_t                        # rows fed to every weight tile

    # ---- boundary rows: one row per (time-tile, batch); no full xprev tensor -
    if NT > 1:
        inner = x[:, tile_t - 1:T - 1:tile_t, :]                 # (B, NT-1, C)
        bnd = jnp.concatenate([shift_state[:, None, :], inner], axis=1)
    else:
        bnd = shift_state[:, None, :]                            # (B, 1, C)
    bnd = jnp.transpose(bnd, (1, 0, 2))[:, :, None, :]           # (NT, B, 1, C)

    x_p = _pad_axis(_pad_axis(x, 1, Tp), 2, Cp).astype(cdt)      # (B, Tp, Cp)
    bnd_p = _pad_axis(bnd, 3, Cp).astype(cdt)                    # (NT, B, 1, Cp)

    # ---- per-chip VMEM budget (v5e/v6e: ~108 MiB, v7x: ~54 MiB) ---------------
    try:
        vmem_cap = int(pltpu.get_tpu_info().vmem_capacity_bytes)
    except Exception:
        vmem_cap = 64 * 1024 * 1024
    vmem_limit = max(32 * 1024 * 1024,
                     min(int(vmem_cap * 0.85), 110 * 1024 * 1024))

    # ---- advisory cost estimate (wk/wv are re-streamed once per time tile) ---
    itemsize = jnp.dtype(cdt).itemsize
    flops = 2 * B * Tp * (2 * Cp * Fp + Cp * Cp)
    transcendentals = B * Tp * Cp
    bytes_accessed = (
        x_p.size * itemsize
        + B * Tp * Cp * jnp.dtype(out_dtype).itemsize
        + bnd_p.size * itemsize
        + (maak.size + maar.size) * 4
        + NT * (wk.size + wv.size) * itemsize     # streamed per time-tile
        + wr.size * itemsize)                     # resident: read once

    if wr_resident:
        # Whole receptance weight pinned once in VMEM (single copy, single DMA).
        wr_spec = pl.BlockSpec(memory_space=pltpu.MemorySpace.VMEM)
    else:
        # Fallback: standard full-array windowed block (double-buffered).
        wr_spec = pl.BlockSpec((Cp, Cp), lambda j, f: (0, 0))

    out_p = pl.pallas_call(
        _cmix_kernel,
        out_shape=jax.ShapeDtypeStruct((B, Tp, Cp), out_dtype),
        grid_spec=pltpu.PrefetchScalarGridSpec(
            num_scalar_prefetch=0,
            grid=(NT, NF),
            in_specs=[
                pl.BlockSpec((B, tile_t, Cp), lambda j, f: (0, j, 0)),       # x
                pl.BlockSpec((None, B, 1, Cp), lambda j, f: (j, 0, 0, 0)),   # boundary rows
                pl.BlockSpec((1, Cp), lambda j, f: (0, 0)),                  # time_maa_k
                pl.BlockSpec((1, Cp), lambda j, f: (0, 0)),                  # time_maa_r
                pl.BlockSpec((Cp, tf), lambda j, f: (0, f)),                 # w_key   (F-tiled)
                pl.BlockSpec((tf, Cp), lambda j, f: (f, 0)),                 # w_value (F-tiled)
                wr_spec,                                                     # w_receptance
            ],
            out_specs=pl.BlockSpec((B, tile_t, Cp), lambda j, f: (0, j, 0)),
            scratch_shapes=[
                pltpu.VMEM((rows, Cp), cdt),          # xk (mixed, matmul dtype)
                pltpu.VMEM((rows, Cp), cdt),          # xr (mixed, matmul dtype)
                pltpu.VMEM((rows, Cp), jnp.float32),  # kv accumulator
            ],
        ),
        compiler_params=pltpu.CompilerParams(
            dimension_semantics=("parallel", "arbitrary"),
            vmem_limit_bytes=vmem_limit),
        cost_estimate=pl.CostEstimate(
            flops=flops,
            transcendentals=transcendentals,
            bytes_accessed=bytes_accessed),
    )(x_p, bnd_p, maak, maar, wk, wv, wr)

    out = out_p[:, :T, :C]
    new_shift_state = x[:, -1, :]
    return out, new_shift_state


def _reference(x, shift_state, time_maa_k, time_maa_r, w_key, w_recept, w_value):
    xprev = jnp.concatenate([shift_state[:, None, :], x[:, :-1, :]], axis=1)
    dx = xprev - x
    xk = x + dx * time_maa_k[None, None, :]
    xr = x + dx * time_maa_r[None, None, :]
    k = jnp.maximum(xk @ w_key, 0.0) ** 2
    kv = k @ w_value
    return jax.nn.sigmoid(xr @ w_recept) * kv, x[:, -1, :]


if __name__ == "__main__":
    # Small shapes consistent with CMix_x060.
    B, T = 2, 8
    n_embd = 32       # C
    dim_ffn = 96      # F
    n_layer = 4
    layer_id = 1

    # Deterministic parameter init mirroring CMix_x060.__init__.
    ratio_1_to_almost0 = 1.0 - layer_id / n_layer
    ddd = jnp.arange(n_embd, dtype=jnp.float32) / n_embd
    time_maa_k = 1.0 - jnp.power(ddd, ratio_1_to_almost0)
    time_maa_r = 1.0 - jnp.power(ddd, ratio_1_to_almost0)

    key = jax.random.PRNGKey(0)
    k_x, k_s, k_wk, k_wr, k_wv = jax.random.split(key, 5)
    # Linear weights stored as (in, out) so that y = x @ W (== PyTorch x @ W.T).
    w_key = jax.random.normal(k_wk, (n_embd, dim_ffn), jnp.float32) * 0.05
    w_receptance = jax.random.normal(k_wr, (n_embd, n_embd), jnp.float32) * 0.05
    w_value = jax.random.normal(k_wv, (dim_ffn, n_embd), jnp.float32) * 0.05

    x = jax.random.normal(k_x, (B, T, n_embd), jnp.float32)
    shift_state = jax.random.normal(k_s, (B, n_embd), jnp.float32)

    # One-time weight pad + bf16 cast (model-load cost, not per-call).
    params = prepare_cmix_params(time_maa_k, time_maa_r,
                                 w_key, w_receptance, w_value)

    def run(wr_resident):
        o, s = cmix_x060_forward(
            x, shift_state, params["maak"], params["maar"],
            params["wk"], params["wv"], params["wr"],
            wr_resident=wr_resident)
        return jax.block_until_ready(o), jax.block_until_ready(s)

    try:
        out, new_state = run(True)
    except Exception:
        # Fallback: stream w_receptance through the standard windowed pipeline
        # if whole-array VMEM residency is rejected on this jax/libtpu build.
        out, new_state = run(False)

    ref_out, ref_state = _reference(
        x, shift_state, time_maa_k, time_maa_r,
        w_key, w_receptance, w_value)

    assert out.shape == (B, T, n_embd)
    assert new_state.shape == (B, n_embd)
    # bf16 MXU operands (f32 accumulation) -> modest tolerance vs f32 reference.
    assert jnp.allclose(out, ref_out, atol=3e-2, rtol=3e-2), \
        float(jnp.max(jnp.abs(out - ref_out)))
    assert jnp.allclose(new_state, ref_state)

    print("KERNEL_OK")
</pallas_src>

<mosaic_0001>
module attributes {stable_mosaic.version = 11 : i64} {
  func.func @_cmix_kernel(%arg0: i32, %arg1: i32, %arg2: memref<2x8x128xbf16, #tpu.memory_space<vmem>>, %arg3: memref<1x2x1x128xbf16, #tpu.memory_space<vmem>>, %arg4: memref<1x128xf32, #tpu.memory_space<vmem>>, %arg5: memref<1x128xf32, #tpu.memory_space<vmem>>, %arg6: memref<128x128xbf16, #tpu.memory_space<vmem>>, %arg7: memref<128x128xbf16, #tpu.memory_space<vmem>>, %arg8: memref<128x128xbf16, #tpu.memory_space<vmem>>, %arg9: memref<2x8x128xf32, #tpu.memory_space<vmem>>, %arg10: memref<16x128xbf16, #tpu.memory_space<vmem>>, %arg11: memref<16x128xbf16, #tpu.memory_space<vmem>>, %arg12: memref<16x128xf32, #tpu.memory_space<vmem>>) attributes {dimension_semantics = [#tpu.dimension_semantics<parallel>, #tpu.dimension_semantics<arbitrary>], iteration_bounds = array<i64: 1, 1>, scalar_prefetch = 0 : i64, scratch_operands = 3 : i64, tpu.core_type = #tpu.core_type<tc>, window_params = [{transform_indices = @transform_0, window_bounds = array<i64: 2, 8, 128>}, {transform_indices = @transform_1, window_bounds = array<i64: 1, 2, 1, 128>}, {pipeline_mode = #tpu.pipeline_mode<synchronous>, transform_indices = @transform_2, window_bounds = array<i64: 1, 128>}, {pipeline_mode = #tpu.pipeline_mode<synchronous>, transform_indices = @transform_3, window_bounds = array<i64: 1, 128>}, {transform_indices = @transform_4, window_bounds = array<i64: 128, 128>}, {transform_indices = @transform_5, window_bounds = array<i64: 128, 128>}, {pipeline_mode = #tpu.pipeline_mode<synchronous>, transform_indices = @transform_6, window_bounds = array<i64: 128, 128>}, {transform_indices = @transform_7, window_bounds = array<i64: 2, 8, 128>}]} {
    %c0_i32 = arith.constant 0 : i32
    %0 = arith.cmpi eq, %arg1, %c0_i32 : i32
    %1 = arith.extui %0 : i1 to i32
    %c0_i32_0 = arith.constant 0 : i32
    %2 = arith.cmpi ne, %1, %c0_i32_0 : i32
    scf.if %2 {
      %c0_14 = arith.constant 0 : index
      %c0_15 = arith.constant 0 : index
      %c0_16 = arith.constant 0 : index
      %18 = vector.load %arg2[%c0_14, %c0_15, %c0_16] : memref<2x8x128xbf16, #tpu.memory_space<vmem>>, vector<2x8x128xbf16>
      %19 = arith.extf %18 : vector<2x8x128xbf16> to vector<2x8x128xf32>
      %20 = vector.shape_cast %19 : vector<2x8x128xf32> to vector<16x128xf32>
      %c1_i32 = arith.constant 1 : i32
      %21 = tpu.dynamic_rotate %20 by %c1_i32 dim 0 : vector<16x128xf32>, i32 -> vector<16x128xf32>
      %22 = vector.shape_cast %21 : vector<16x128xf32> to vector<2x8x128xf32>
      %23 = tpu.iota {dimensions = array<i32: 1>} : vector<2x8x128xi32>
      %c0_i32_17 = arith.constant 0 : i32
      %24 = vector.broadcast %c0_i32_17 : i32 to vector<2x8x128xi32>
      %25 = arith.cmpi eq, %23, %24 : vector<2x8x128xi32>
      %c0_18 = arith.constant 0 : index
      %c0_19 = arith.constant 0 : index
      %c0_20 = arith.constant 0 : index
      %c0_21 = arith.constant 0 : index
      %26 = vector.load %arg3[%c0_18, %c0_19, %c0_20, %c0_21] : memref<1x2x1x128xbf16, #tpu.memory_space<vmem>>, vector<1x2x1x128xbf16>
      %27 = vector.shape_cast %26 : vector<1x2x1x128xbf16> to vector<2x1x128xbf16>
      %28 = arith.extf %27 : vector<2x1x128xbf16> to vector<2x1x128xf32>
      %29 = vector.shape_cast %28 : vector<2x1x128xf32> to vector<2x1x128xf32>
      %30 = vector.broadcast %29 : vector<2x1x128xf32> to vector<2x8x128xf32>
      %31 = arith.select %25, %30, %22 : vector<2x8x128xi1>, vector<2x8x128xf32>
      %32 = vector.shape_cast %19 : vector<2x8x128xf32> to vector<16x128xf32>
      %33 = vector.shape_cast %31 : vector<2x8x128xf32> to vector<16x128xf32>
      %34 = arith.subf %33, %32 : vector<16x128xf32>
      %c0_22 = arith.constant 0 : index
      %c0_23 = arith.constant 0 : index
      %35 = vector.load %arg4[%c0_22, %c0_23] : memref<1x128xf32, #tpu.memory_space<vmem>>, vector<1x128xf32>
      %36 = vector.broadcast %35 : vector<1x128xf32> to vector<16x128xf32>
      %37 = arith.mulf %34, %36 : vector<16x128xf32>
      %38 = arith.addf %32, %37 : vector<16x128xf32>
      %39 = arith.truncf %38 : vector<16x128xf32> to vector<16x128xbf16>
      %c0_24 = arith.constant 0 : index
      %c0_25 = arith.constant 0 : index
      %40 = vector.load %arg10[%c0_24, %c0_25] : memref<16x128xbf16, #tpu.memory_space<vmem>>, vector<16x128xbf16>
      tpu.vector_store %arg10[%c0_24, %c0_25], %39 {strides = array<i32>} : memref<16x128xbf16, #tpu.memory_space<vmem>>, vector<16x128xbf16>,
      %c0_26 = arith.constant 0 : index
      %c0_27 = arith.constant 0 : index
      %41 = vector.load %arg5[%c0_26, %c0_27] : memref<1x128xf32, #tpu.memory_space<vmem>>, vector<1x128xf32>
      %42 = vector.broadcast %41 : vector<1x128xf32> to vector<16x128xf32>
      %43 = arith.mulf %34, %42 : vector<16x128xf32>
      %44 = arith.addf %32, %43 : vector<16x128xf32>
      %45 = arith.truncf %44 : vector<16x128xf32> to vector<16x128xbf16>
      %c0_28 = arith.constant 0 : index
      %c0_29 = arith.constant 0 : index
      %46 = vector.load %arg11[%c0_28, %c0_29] : memref<16x128xbf16, #tpu.memory_space<vmem>>, vector<16x128xbf16>
      tpu.vector_store %arg11[%c0_28, %c0_29], %45 {strides = array<i32>} : memref<16x128xbf16, #tpu.memory_space<vmem>>, vector<16x128xbf16>,
      %cst_30 = arith.constant 0.000000e+00 : f32
      %47 = vector.broadcast %cst_30 : f32 to vector<16x128xf32>
      %c0_31 = arith.constant 0 : index
      %c0_32 = arith.constant 0 : index
      %48 = vector.load %arg12[%c0_31, %c0_32] : memref<16x128xf32, #tpu.memory_space<vmem>>, vector<16x128xf32>
      tpu.vector_store %arg12[%c0_31, %c0_32], %47 {strides = array<i32>} : memref<16x128xf32, #tpu.memory_space<vmem>>, vector<16x128xf32>,
    } else {
    }
    %c0 = arith.constant 0 : index
    %c0_1 = arith.constant 0 : index
    %3 = vector.load %arg10[%c0, %c0_1] : memref<16x128xbf16, #tpu.memory_space<vmem>>, vector<16x128xbf16>
    %c0_2 = arith.constant 0 : index
    %c0_3 = arith.constant 0 : index
    %4 = vector.load %arg6[%c0_2, %c0_3] : memref<128x128xbf16, #tpu.memory_space<vmem>>, vector<128x128xbf16>
    %cst = arith.constant dense<0.000000e+00> : vector<16x128xf32>
    %5 = tpu.matmul %3, %4, %cst {dimension_numbers = #tpu.dot_dimension_numbers<[1], [0], [0], [1], [0, 0, 1, 1], [], []>} : vector<16x128xbf16>, vector<128x128xbf16>, vector<16x128xf32> -> vector<16x128xf32>
    %cst_4 = arith.constant 0.000000e+00 : f32
    %6 = vector.broadcast %cst_4 : f32 to vector<16x128xf32>
    %7 = arith.maximumf %5, %6 : vector<16x128xf32>
    %8 = arith.mulf %7, %7 : vector<16x128xf32>
    %c0_5 = arith.constant 0 : index
    %c0_6 = arith.constant 0 : index
    %9 = vector.load %arg12[%c0_5, %c0_6] : memref<16x128xf32, #tpu.memory_space<vmem>>, vector<16x128xf32>
    %10 = arith.truncf %8 : vector<16x128xf32> to vector<16x128xbf16>
    %c0_7 = arith.constant 0 : index
    %c0_8 = arith.constant 0 : index
    %11 = vector.load %arg7[%c0_7, %c0_8] : memref<128x128xbf16, #tpu.memory_space<vmem>>, vector<128x128xbf16>
    %cst_9 = arith.constant dense<0.000000e+00> : vector<16x128xf32>
    %12 = tpu.matmul %10, %11, %cst_9 {dimension_numbers = #tpu.dot_dimension_numbers<[1], [0], [0], [1], [0, 0, 1, 1], [], []>} : vector<16x128xbf16>, vector<128x128xbf16>, vector<16x128xf32> -> vector<16x128xf32>
    %13 = arith.addf %9, %12 : vector<16x128xf32>
    %c0_10 = arith.constant 0 : index
    %c0_11 = arith.constant 0 : index
    %14 = vector.load %arg12[%c0_10, %c0_11] : memref<16x128xf32, #tpu.memory_space<vmem>>, vector<16x128xf32>
    tpu.vector_store %arg12[%c0_10, %c0_11], %13 {strides = array<i32>} : memref<16x128xf32, #tpu.memory_space<vmem>>, vector<16x128xf32>,
    %c0_i32_12 = arith.constant 0 : i32
    %15 = arith.cmpi eq, %arg1, %c0_i32_12 : i32
    %16 = arith.extui %15 : i1 to i32
    %c0_i32_13 = arith.constant 0 : i32
    %17 = arith.cmpi ne, %16, %c0_i32_13 : i32
    scf.if %17 {
      %c0_14 = arith.constant 0 : index
      %c0_15 = arith.constant 0 : index
      %18 = vector.load %arg11[%c0_14, %c0_15] : memref<16x128xbf16, #tpu.memory_space<vmem>>, vector<16x128xbf16>
      %c0_16 = arith.constant 0 : index
      %c0_17 = arith.constant 0 : index
      %19 = vector.load %arg8[%c0_16, %c0_17] : memref<128x128xbf16, #tpu.memory_space<vmem>>, vector<128x128xbf16>
      %cst_18 = arith.constant dense<0.000000e+00> : vector<16x128xf32>
      %20 = tpu.matmul %18, %19, %cst_18 {dimension_numbers = #tpu.dot_dimension_numbers<[1], [0], [0], [1], [0, 0, 1, 1], [], []>} : vector<16x128xbf16>, vector<128x128xbf16>, vector<16x128xf32> -> vector<16x128xf32>
      %21 = arith.negf %20 : vector<16x128xf32>
      %22 = math.exp %21 : vector<16x128xf32>
      %cst_19 = arith.constant 1.000000e+00 : f32
      %23 = vector.broadcast %cst_19 : f32 to vector<16x128xf32>
      %24 = arith.addf %23, %22 : vector<16x128xf32>
      %25 = arith.divf %23, %24 : vector<16x128xf32>
      %c0_20 = arith.constant 0 : index
      %c0_21 = arith.constant 0 : index
      %26 = vector.load %arg12[%c0_20, %c0_21] : memref<16x128xf32, #tpu.memory_space<vmem>>, vector<16x128xf32>
      %27 = arith.mulf %25, %26 : vector<16x128xf32>
      %28 = vector.shape_cast %27 : vector<16x128xf32> to vector<2x8x128xf32>
      %c0_22 = arith.constant 0 : index
      %c0_23 = arith.constant 0 : index
      %c0_24 = arith.constant 0 : index
      %29 = vector.load %arg9[%c0_22, %c0_23, %c0_24] : memref<2x8x128xf32, #tpu.memory_space<vmem>>, vector<2x8x128xf32>
      tpu.vector_store %arg9[%c0_22, %c0_23, %c0_24], %28 {strides = array<i32>} : memref<2x8x128xf32, #tpu.memory_space<vmem>>, vector<2x8x128xf32>,
    } else {
    }
    return
  }
  func.func @transform_0(%arg0: i32, %arg1: i32) -> (i32, i32, i32) {
    %c0_i32 = arith.constant 0 : i32
    %c0_i32_0 = arith.constant 0 : i32
    %c0_i32_1 = arith.constant 0 : i32
    return %c0_i32, %arg0, %c0_i32_0 : i32, i32, i32
  }
  func.func @transform_1(%arg0: i32, %arg1: i32) -> (i32, i32, i32, i32) {
    %c0_i32 = arith.constant 0 : i32
    %c0_i32_0 = arith.constant 0 : i32
    %c0_i32_1 = arith.constant 0 : i32
    %c0_i32_2 = arith.constant 0 : i32
    return %arg0, %c0_i32, %c0_i32_0, %c0_i32_1 : i32, i32, i32, i32
  }
  func.func @transform_2(%arg0: i32, %arg1: i32) -> (i32, i32) {
    %c0_i32 = arith.constant 0 : i32
    %c0_i32_0 = arith.constant 0 : i32
    %c0_i32_1 = arith.constant 0 : i32
    return %c0_i32, %c0_i32_0 : i32, i32
  }
  func.func @transform_3(%arg0: i32, %arg1: i32) -> (i32, i32) {
    %c0_i32 = arith.constant 0 : i32
    %c0_i32_0 = arith.constant 0 : i32
    %c0_i32_1 = arith.constant 0 : i32
    return %c0_i32, %c0_i32_0 : i32, i32
  }
  func.func @transform_4(%arg0: i32, %arg1: i32) -> (i32, i32) {
    %c0_i32 = arith.constant 0 : i32
    %c0_i32_0 = arith.constant 0 : i32
    return %c0_i32, %arg1 : i32, i32
  }
  func.func @transform_5(%arg0: i32, %arg1: i32) -> (i32, i32) {
    %c0_i32 = arith.constant 0 : i32
    %c0_i32_0 = arith.constant 0 : i32
    return %arg1, %c0_i32 : i32, i32
  }
  func.func @transform_6(%arg0: i32, %arg1: i32) -> (i32, i32) {
    %c0_i32 = arith.constant 0 : i32
    %c0_i32_0 = arith.constant 0 : i32
    %c0_i32_1 = arith.constant 0 : i32
    return %c0_i32, %c0_i32_0 : i32, i32
  }
  func.func @transform_7(%arg0: i32, %arg1: i32) -> (i32, i32, i32) {
    %c0_i32 = arith.constant 0 : i32
    %c0_i32_0 = arith.constant 0 : i32
    %c0_i32_1 = arith.constant 0 : i32
    return %c0_i32, %arg0, %c0_i32_0 : i32, i32, i32
  }
}

module attributes {stable_mosaic.version = 11 : i64} {
  func.func @_cmix_kernel(%arg0: i32, %arg1: i32, %arg2: memref<2x8x128xbf16, #tpu.memory_space<vmem>>, %arg3: memref<1x2x1x128xbf16, #tpu.memory_space<vmem>>, %arg4: memref<1x128xf32, #tpu.memory_space<vmem>>, %arg5: memref<1x128xf32, #tpu.memory_space<vmem>>, %arg6: memref<128x128xbf16, #tpu.memory_space<vmem>>, %arg7: memref<128x128xbf16, #tpu.memory_space<vmem>>, %arg8: memref<128x128xbf16, #tpu.memory_space<vmem>>, %arg9: memref<2x8x128xf32, #tpu.memory_space<vmem>>, %arg10: memref<16x128xbf16, #tpu.memory_space<vmem>>, %arg11: memref<16x128xbf16, #tpu.memory_space<vmem>>, %arg12: memref<16x128xf32, #tpu.memory_space<vmem>>) attributes {dimension_semantics = [#tpu.dimension_semantics<parallel>, #tpu.dimension_semantics<arbitrary>], iteration_bounds = array<i64: 1, 1>, scalar_prefetch = 0 : i64, scratch_operands = 3 : i64, tpu.core_type = #tpu.core_type<tc>, window_params = [{transform_indices = @transform_0, window_bounds = array<i64: 2, 8, 128>}, {transform_indices = @transform_1, window_bounds = array<i64: 1, 2, 1, 128>}, {pipeline_mode = #tpu.pipeline_mode<synchronous>, transform_indices = @transform_2, window_bounds = array<i64: 1, 128>}, {pipeline_mode = #tpu.pipeline_mode<synchronous>, transform_indices = @transform_3, window_bounds = array<i64: 1, 128>}, {transform_indices = @transform_4, window_bounds = array<i64: 128, 128>}, {transform_indices = @transform_5, window_bounds = array<i64: 128, 128>}, {pipeline_mode = #tpu.pipeline_mode<synchronous>, transform_indices = @transform_6, window_bounds = array<i64: 128, 128>}, {transform_indices = @transform_7, window_bounds = array<i64: 2, 8, 128>}]} {
    %c0_i32 = arith.constant 0 : i32
    %0 = arith.cmpi eq, %arg1, %c0_i32 : i32
    %1 = arith.extui %0 : i1 to i32
    %c0_i32_0 = arith.constant 0 : i32
    %2 = arith.cmpi ne, %1, %c0_i32_0 : i32
    scf.if %2 {
      %c0_14 = arith.constant 0 : index
      %c0_15 = arith.constant 0 : index
      %c0_16 = arith.constant 0 : index
      %18 = vector.load %arg2[%c0_14, %c0_15, %c0_16] : memref<2x8x128xbf16, #tpu.memory_space<vmem>>, vector<2x8x128xbf16>
      %19 = arith.extf %18 : vector<2x8x128xbf16> to vector<2x8x128xf32>
      %20 = vector.shape_cast %19 : vector<2x8x128xf32> to vector<16x128xf32>
      %c1_i32 = arith.constant 1 : i32
      %21 = tpu.dynamic_rotate %20 by %c1_i32 dim 0 : vector<16x128xf32>, i32 -> vector<16x128xf32>
      %22 = vector.shape_cast %21 : vector<16x128xf32> to vector<2x8x128xf32>
      %23 = tpu.iota {dimensions = array<i32: 1>} : vector<2x8x128xi32>
      %c0_i32_17 = arith.constant 0 : i32
      %24 = vector.broadcast %c0_i32_17 : i32 to vector<2x8x128xi32>
      %25 = arith.cmpi eq, %23, %24 : vector<2x8x128xi32>
      %c0_18 = arith.constant 0 : index
      %c0_19 = arith.constant 0 : index
      %c0_20 = arith.constant 0 : index
      %c0_21 = arith.constant 0 : index
      %26 = vector.load %arg3[%c0_18, %c0_19, %c0_20, %c0_21] : memref<1x2x1x128xbf16, #tpu.memory_space<vmem>>, vector<1x2x1x128xbf16>
      %27 = vector.shape_cast %26 : vector<1x2x1x128xbf16> to vector<2x1x128xbf16>
      %28 = arith.extf %27 : vector<2x1x128xbf16> to vector<2x1x128xf32>
      %29 = vector.shape_cast %28 : vector<2x1x128xf32> to vector<2x1x128xf32>
      %30 = vector.broadcast %29 : vector<2x1x128xf32> to vector<2x8x128xf32>
      %31 = arith.select %25, %30, %22 : vector<2x8x128xi1>, vector<2x8x128xf32>
      %32 = vector.shape_cast %19 : vector<2x8x128xf32> to vector<16x128xf32>
      %33 = vector.shape_cast %31 : vector<2x8x128xf32> to vector<16x128xf32>
      %34 = arith.subf %33, %32 : vector<16x128xf32>
      %c0_22 = arith.constant 0 : index
      %c0_23 = arith.constant 0 : index
      %35 = vector.load %arg4[%c0_22, %c0_23] : memref<1x128xf32, #tpu.memory_space<vmem>>, vector<1x128xf32>
      %36 = vector.broadcast %35 : vector<1x128xf32> to vector<16x128xf32>
      %37 = arith.mulf %34, %36 : vector<16x128xf32>
      %38 = arith.addf %32, %37 : vector<16x128xf32>
      %39 = arith.truncf %38 : vector<16x128xf32> to vector<16x128xbf16>
      %c0_24 = arith.constant 0 : index
      %c0_25 = arith.constant 0 : index
      %40 = vector.load %arg10[%c0_24, %c0_25] : memref<16x128xbf16, #tpu.memory_space<vmem>>, vector<16x128xbf16>
      tpu.vector_store %arg10[%c0_24, %c0_25], %39 {strides = array<i32>} : memref<16x128xbf16, #tpu.memory_space<vmem>>, vector<16x128xbf16>,
      %c0_26 = arith.constant 0 : index
      %c0_27 = arith.constant 0 : index
      %41 = vector.load %arg5[%c0_26, %c0_27] : memref<1x128xf32, #tpu.memory_space<vmem>>, vector<1x128xf32>
      %42 = vector.broadcast %41 : vector<1x128xf32> to vector<16x128xf32>
      %43 = arith.mulf %34, %42 : vector<16x128xf32>
      %44 = arith.addf %32, %43 : vector<16x128xf32>
      %45 = arith.truncf %44 : vector<16x128xf32> to vector<16x128xbf16>
      %c0_28 = arith.constant 0 : index
      %c0_29 = arith.constant 0 : index
      %46 = vector.load %arg11[%c0_28, %c0_29] : memref<16x128xbf16, #tpu.memory_space<vmem>>, vector<16x128xbf16>
      tpu.vector_store %arg11[%c0_28, %c0_29], %45 {strides = array<i32>} : memref<16x128xbf16, #tpu.memory_space<vmem>>, vector<16x128xbf16>,
      %cst_30 = arith.constant 0.000000e+00 : f32
      %47 = vector.broadcast %cst_30 : f32 to vector<16x128xf32>
      %c0_31 = arith.constant 0 : index
      %c0_32 = arith.constant 0 : index
      %48 = vector.load %arg12[%c0_31, %c0_32] : memref<16x128xf32, #tpu.memory_space<vmem>>, vector<16x128xf32>
      tpu.vector_store %arg12[%c0_31, %c0_32], %47 {strides = array<i32>} : memref<16x128xf32, #tpu.memory_space<vmem>>, vector<16x128xf32>,
    } else {
    }
    %c0 = arith.constant 0 : index
    %c0_1 = arith.constant 0 : index
    %3 = vector.load %arg10[%c0, %c0_1] : memref<16x128xbf16, #tpu.memory_space<vmem>>, vector<16x128xbf16>
    %c0_2 = arith.constant 0 : index
    %c0_3 = arith.constant 0 : index
    %4 = vector.load %arg6[%c0_2, %c0_3] : memref<128x128xbf16, #tpu.memory_space<vmem>>, vector<128x128xbf16>
    %cst = arith.constant dense<0.000000e+00> : vector<16x128xf32>
    %5 = tpu.matmul %3, %4, %cst {dimension_numbers = #tpu.dot_dimension_numbers<[1], [0], [0], [1], [0, 0, 1, 1], [], []>} : vector<16x128xbf16>, vector<128x128xbf16>, vector<16x128xf32> -> vector<16x128xf32>
    %cst_4 = arith.constant 0.000000e+00 : f32
    %6 = vector.broadcast %cst_4 : f32 to vector<16x128xf32>
    %7 = arith.maximumf %5, %6 : vector<16x128xf32>
    %8 = arith.mulf %7, %7 : vector<16x128xf32>
    %c0_5 = arith.constant 0 : index
    %c0_6 = arith.constant 0 : index
    %9 = vector.load %arg12[%c0_5, %c0_6] : memref<16x128xf32, #tpu.memory_space<vmem>>, vector<16x128xf32>
    %10 = arith.truncf %8 : vector<16x128xf32> to vector<16x128xbf16>
    %c0_7 = arith.constant 0 : index
    %c0_8 = arith.constant 0 : index
    %11 = vector.load %arg7[%c0_7, %c0_8] : memref<128x128xbf16, #tpu.memory_space<vmem>>, vector<128x128xbf16>
    %cst_9 = arith.constant dense<0.000000e+00> : vector<16x128xf32>
    %12 = tpu.matmul %10, %11, %cst_9 {dimension_numbers = #tpu.dot_dimension_numbers<[1], [0], [0], [1], [0, 0, 1, 1], [], []>} : vector<16x128xbf16>, vector<128x128xbf16>, vector<16x128xf32> -> vector<16x128xf32>
    %13 = arith.addf %9, %12 : vector<16x128xf32>
    %c0_10 = arith.constant 0 : index
    %c0_11 = arith.constant 0 : index
    %14 = vector.load %arg12[%c0_10, %c0_11] : memref<16x128xf32, #tpu.memory_space<vmem>>, vector<16x128xf32>
    tpu.vector_store %arg12[%c0_10, %c0_11], %13 {strides = array<i32>} : memref<16x128xf32, #tpu.memory_space<vmem>>, vector<16x128xf32>,
    %c0_i32_12 = arith.constant 0 : i32
    %15 = arith.cmpi eq, %arg1, %c0_i32_12 : i32
    %16 = arith.extui %15 : i1 to i32
    %c0_i32_13 = arith.constant 0 : i32
    %17 = arith.cmpi ne, %16, %c0_i32_13 : i32
    scf.if %17 {
      %c0_14 = arith.constant 0 : index
      %c0_15 = arith.constant 0 : index
      %18 = vector.load %arg11[%c0_14, %c0_15] : memref<16x128xbf16, #tpu.memory_space<vmem>>, vector<16x128xbf16>
      %c0_16 = arith.constant 0 : index
      %c0_17 = arith.constant 0 : index
      %19 = vector.load %arg8[%c0_16, %c0_17] : memref<128x128xbf16, #tpu.memory_space<vmem>>, vector<128x128xbf16>
      %cst_18 = arith.constant dense<0.000000e+00> : vector<16x128xf32>
      %20 = tpu.matmul %18, %19, %cst_18 {dimension_numbers = #tpu.dot_dimension_numbers<[1], [0], [0], [1], [0, 0, 1, 1], [], []>} : vector<16x128xbf16>, vector<128x128xbf16>, vector<16x128xf32> -> vector<16x128xf32>
      %21 = arith.negf %20 : vector<16x128xf32>
      %22 = math.exp %21 : vector<16x128xf32>
      %cst_19 = arith.constant 1.000000e+00 : f32
      %23 = vector.broadcast %cst_19 : f32 to vector<16x128xf32>
      %24 = arith.addf %23, %22 : vector<16x128xf32>
      %25 = arith.divf %23, %24 : vector<16x128xf32>
      %c0_20 = arith.constant 0 : index
      %c0_21 = arith.constant 0 : index
      %26 = vector.load %arg12[%c0_20, %c0_21] : memref<16x128xf32, #tpu.memory_space<vmem>>, vector<16x128xf32>
      %27 = arith.mulf %25, %26 : vector<16x128xf32>
      %28 = vector.shape_cast %27 : vector<16x128xf32> to vector<2x8x128xf32>
      %c0_22 = arith.constant 0 : index
      %c0_23 = arith.constant 0 : index
      %c0_24 = arith.constant 0 : index
      %29 = vector.load %arg9[%c0_22, %c0_23, %c0_24] : memref<2x8x128xf32, #tpu.memory_space<vmem>>, vector<2x8x128xf32>
      tpu.vector_store %arg9[%c0_22, %c0_23, %c0_24], %28 {strides = array<i32>} : memref<2x8x128xf32, #tpu.memory_space<vmem>>, vector<2x8x128xf32>,
    } else {
    }
    return
  }
  func.func @transform_0(%arg0: i32, %arg1: i32) -> (i32, i32, i32) {
    %c0_i32 = arith.constant 0 : i32
    %c0_i32_0 = arith.constant 0 : i32
    %c0_i32_1 = arith.constant 0 : i32
    return %c0_i32, %arg0, %c0_i32_0 : i32, i32, i32
  }
  func.func @transform_1(%arg0: i32, %arg1: i32) -> (i32, i32, i32, i32) {
    %c0_i32 = arith.constant 0 : i32
    %c0_i32_0 = arith.constant 0 : i32
    %c0_i32_1 = arith.constant 0 : i32
    %c0_i32_2 = arith.constant 0 : i32
    return %arg0, %c0_i32, %c0_i32_0, %c0_i32_1 : i32, i32, i32, i32
  }
  func.func @transform_2(%arg0: i32, %arg1: i32) -> (i32, i32) {
    %c0_i32 = arith.constant 0 : i32
    %c0_i32_0 = arith.constant 0 : i32
    %c0_i32_1 = arith.constant 0 : i32
    return %c0_i32, %c0_i32_0 : i32, i32
  }
  func.func @transform_3(%arg0: i32, %arg1: i32) -> (i32, i32) {
    %c0_i32 = arith.constant 0 : i32
    %c0_i32_0 = arith.constant 0 : i32
    %c0_i32_1 = arith.constant 0 : i32
    return %c0_i32, %c0_i32_0 : i32, i32
  }
  func.func @transform_4(%arg0: i32, %arg1: i32) -> (i32, i32) {
    %c0_i32 = arith.constant 0 : i32
    %c0_i32_0 = arith.constant 0 : i32
    return %c0_i32, %arg1 : i32, i32
  }
  func.func @transform_5(%arg0: i32, %arg1: i32) -> (i32, i32) {
    %c0_i32 = arith.constant 0 : i32
    %c0_i32_0 = arith.constant 0 : i32
    return %arg1, %c0_i32 : i32, i32
  }
  func.func @transform_6(%arg0: i32, %arg1: i32) -> (i32, i32) {
    %c0_i32 = arith.constant 0 : i32
    %c0_i32_0 = arith.constant 0 : i32
    %c0_i32_1 = arith.constant 0 : i32
    return %c0_i32, %c0_i32_0 : i32, i32
  }
  func.func @transform_7(%arg0: i32, %arg1: i32) -> (i32, i32, i32) {
    %c0_i32 = arith.constant 0 : i32
    %c0_i32_0 = arith.constant 0 : i32
    %c0_i32_1 = arith.constant 0 : i32
    return %c0_i32, %arg0, %c0_i32_0 : i32, i32, i32
  }
}

</mosaic_0001>

<bundles_post_ra>
// kernel: cmix_x060_forward.1
= control target key start
LH: loop header
LB: loop body
LE: loop exit
PB: predicated region body
PF: predicated region fallthrough
CT: control target
= control target key end

     0   :  { %12 = vsyncpa [#allocation6], 0  ;;  %s924_s0 = inlined_call_operand.vmem [shape: bf16[2,8,128], index: 0, kind: input, shape index: {}]   ;;  %s925_s1 = inlined_call_operand.vmem [shape: bf16[1,2,1,128], index: 1, kind: input, shape index: {}]   ;;  %s926_s2 = inlined_call_operand.vmem [shape: f32[1,128], index: 2, kind: input, shape index: {}]   ;;  %s927_s3 = inlined_call_operand.vmem [shape: f32[1,128], index: 3, kind: input, shape index: {}]   ;;  %s928_s4 = inlined_call_operand.hbm [shape: bf16[128,128], index: 4, kind: input, shape index: {}]   ;;  %s929_s5 = inlined_call_operand.hbm [shape: bf16[128,128], index: 5, kind: input, shape index: {}]   ;;  %s930_s6 = inlined_call_operand.hbm [shape: bf16[128,128], index: 6, kind: input, shape index: {}]   ;;  %s931_s7 = inlined_call_operand.hbm [shape: f32[2,8,128], index: 7, kind: output, shape index: {}]  }
   0x1   :  { %13 = vsyncpa [#allocation9], 0 }
   0x2   :  { %14 = vsyncpa [#allocation7], 0  ;;  %s751_s24 = smov [#allocation8]   ;;  %s752_s26 = smov [#allocation5]  }
   0x3   :  { %s40_s25 = sshll.u32 %s751_s24, 4  ;;  %s28_s27 = sshll.u32 %s752_s26, 4  ;;  %s41_s25 = int_to_ptr.vmem [resolvable:$true] %s40_s25  ;;  %s801_s27 = int_to_ptr.vmem [resolvable:$true] %s28_s27 }
   0x4   :  { %s657_s30 = scalar_lea.hbm %s929_s5, 1024 }
   0x5   :  { %p658_p0 = scmp.ne.s32.totalorder %s929_s5, %s657_s30  ;;  %p661_p1 = scmp.lt.u32.totalorder %s657_s30, %s929_s5 }
   0x7   :  { %p663_p2 = pnand %p661_p1, %p658_p0 }
   0x9   :  { %666 = shalt.err (!%p663_p2)
}
   0xa   :  { %s667_s12 = scalar_lea.vmem %s41_s25, 1024  ;;  %p672_p4 = scmp.lt.s32.totalorder %s41_s25, %s41_s25 }
   0xb   :  { %p668_p3 = scmp.ne.s32.totalorder %s41_s25, %s667_s12  ;;  %p673_p5 = scmp.lt.s32.totalorder %s667_s12, %s667_s12 }
   0xd   :  { %p674_p6 = por %p673_p5, %p672_p4 }
   0xf   :  { %p675_p7 = pnand %p674_p6, %p668_p3 }
  0x11   :  { %678 = shalt.err (!%p675_p7)
}
  0x12   :  { %s753_s13 = smov 64   ;;  %s754_s14 = smov 4  }
  0x13   :  { %46 = dma.hbm_to_vmem [thread:$0]  %s929_s5, 1024, %s41_s25, [#allocation9], %s753_s13, %s753_s13, %s754_s14  }
  0x14   :  { %s679_s19 = scalar_lea.hbm %s928_s4, 1024 }
  0x15   :  { %p680_p8 = scmp.ne.s32.totalorder %s928_s4, %s679_s19  ;;  %p683_p9 = scmp.lt.u32.totalorder %s679_s19, %s928_s4 }
  0x17   :  { %p685_p10 = pnand %p683_p9, %p680_p8 }
  0x19   :  { %688 = shalt.err (!%p685_p10)
}
  0x1a   :  { %s689_s24 = scalar_lea.vmem %s801_s27, 1024  ;;  %p694_p12 = scmp.lt.s32.totalorder %s801_s27, %s801_s27 }
  0x1b   :  { %p690_p11 = scmp.ne.s32.totalorder %s801_s27, %s689_s24  ;;  %p695_p13 = scmp.lt.s32.totalorder %s689_s24, %s689_s24 }
  0x1d   :  { %p696_p0 = por %p695_p13, %p694_p12 }
  0x1f   :  { %p697_p1 = pnand %p696_p0, %p690_p11 }
  0x21   :  { %700 = shalt.err (!%p697_p1)
}
  0x22   :  { %34 = dma.hbm_to_vmem [thread:$0]  %s928_s4, 1024, %s801_s27, [#allocation6], %s753_s13, %s753_s13, %s754_s14  }
  0x23   :  { %s755_s26 = smov [#allocation10]   ;;  %s701_s8 = scalar_lea.hbm %s930_s6, 1024 }
  0x24   :  { %s52_s28 = sshll.u32 %s755_s26, 4  ;;  %p702_p2 = scmp.ne.s32.totalorder %s930_s6, %s701_s8  ;;  %s53_s28 = int_to_ptr.vmem [resolvable:$true] %s52_s28 }
  0x25   :  { %p705_p3 = scmp.lt.u32.totalorder %s701_s8, %s930_s6 }
  0x27   :  { %p707_p4 = pnand %p705_p3, %p702_p2 }
  0x29   :  { %710 = shalt.err (!%p707_p4)
}
  0x2a   :  { %s711_s15 = scalar_lea.vmem %s53_s28, 1024  ;;  %p716_p6 = scmp.lt.s32.totalorder %s53_s28, %s53_s28 }
  0x2b   :  { %p712_p5 = scmp.ne.s32.totalorder %s53_s28, %s711_s15  ;;  %p717_p7 = scmp.lt.s32.totalorder %s711_s15, %s711_s15 }
  0x2d   :  { %p718_p8 = por %p717_p7, %p716_p6 }
  0x2f   :  { %p719_p9 = pnand %p718_p8, %p712_p5 }
  0x31   :  { %722 = shalt.err (!%p719_p9)
}
  0x32   :  { %58 = dma.hbm_to_vmem [thread:$0]  %s930_s6, 1024, %s53_s28, [#allocation9], %s753_s13, %s753_s13, %s754_s14  }
  0x33   :  { %745 = dma.done.wait [#allocation6], 1024  }
  0x34   :  { %746 = vsyncadd [#allocation6], 4294966272 }
  0x35   :  { %747 = dma.done.wait [#allocation9], 2048  }
  0x36   :  { %748 = vsyncadd [#allocation9], 4294965248  ;;  %v756_v0 = vmov 0.0   ;;  %vm757_vm0 = vmmov 0   ;;  %v79_v1 = vlaneseq  ;;  %v625_v2 = vld [vmem:[#allocation5] sm:$0xff]   ;;  %v626_v3 = vld [vmem:[#allocation5 + $0x8] sm:$0xff]  }
  0x37   :  { %555 = vmatprep.subr.bf16.mxu0 %v756_v0  ;;  %571 = vmatprep.mubr.msk.bf16.mxu0 %vm757_vm0, %v756_v0  ;;  %v627_v5 = vld [vmem:[#allocation5 + $0x10] sm:$0xff]   ;;  %v525_v7 = vld [vmem:[%s924_s0] sm:$0xff]   ;;  %v628_v14 = vld [vmem:[#allocation5 + $0x18] sm:$0xff]  }
  0x38   :  { %575 = vmatprep.subr.bf16.mxu1 %v756_v0  ;;  %591 = vmatprep.mubr.msk.bf16.mxu1 %vm757_vm0, %v756_v0  ;;  %v80_v4 = vshrl.u32 %v79_v1, 7  ;;  %v85_v8 = vld [vmem:[%s925_s1] sm:$0x1]  ;;  %v86_v9 = vld [vmem:[%s925_s1 + $0x1] sm:$0x1]  ;;  %v870_v10 = vunpack.c.l.bf16 %v525_v7  ;;  %v872_v11 = vunpack.c.h.bf16 %v525_v7  ;;  %v630_v24 = vld [vmem:[#allocation5 + $0x28] sm:$0xff]  }
  0x39   :  { %556 = vmatpush3.bf16.msra.mxu0 %v625_v2  ;;  %v87_v12 = vunpack.c.l.bf16 %v85_v8  ;;  %v88_v13 = vunpack.c.l.bf16 %v86_v9  ;;  %v629_v21 = vld [vmem:[#allocation5 + $0x20] sm:$0xff]   ;;  %v642_v29 = vld [vmem:[#allocation8 + $0x8] sm:$0xff]   ;;  %v631_v32 = vld [vmem:[#allocation5 + $0x30] sm:$0xff]  }
  0x3a   :  { %557 = vmatprep.subr.bf16.mxu0 %v756_v0  ;;  %v91_v6 = vsub.s32 0, %v80_v4  ;;  %vm81_vm1 = vcmp.lt.s32.totalorder %v80_v4, 1  ;;  %vm84_vm2 = vcmp.eq.s32.totalorder %v80_v4, 0  ;;  %v77_v15 = vrot.slane %v870_v10, 7  ;;  %v496_v27 = vld [vmem:[%s926_s2] ss:$0 sm:$0xff] }
  0x3b   :  { %v78_v16 = vrot.slane %v872_v11, 7  ;;  %v641_v28 = vld [vmem:[#allocation8] sm:$0xff]   ;;  %v643_v33 = vld [vmem:[#allocation8 + $0x10] sm:$0xff]   ;;  %v632_v36 = vld [vmem:[#allocation5 + $0x38] sm:$0xff]  }
  0x3c   :  { %v92_v17 = vrot.slane %v87_v12, %v91_v6  ;;  %v96_v18 = vrot.slane %v88_v13, %v91_v6  ;;  %576 = vmatpush3.bf16.msra.mxu1 %v641_v28  ;;  %v644_v37 = vld [vmem:[#allocation8 + $0x18] sm:$0xff]   ;;  %v633_v39 = vld [vmem:[#allocation10] sm:$0xff]   ;;  %v634_v41 = vld [vmem:[#allocation10 + $0x8] sm:$0xff]  }
  0x3d   :  { %558 = vmatpush3.bf16.msra.mxu0 %v626_v3  ;;  %v82_v19 = vsel %vm81_vm1, %v77_v15, %v78_v16  ;;  %v83_v20 = vsel %vm81_vm1, %v78_v16, %v77_v15  ;;  %577 = vmatprep.subr.bf16.mxu1 %v756_v0  ;;  %v645_v40 = vld [vmem:[#allocation8 + $0x20] sm:$0xff]   ;;  %v646_v42 = vld [vmem:[#allocation8 + $0x28] sm:$0xff]   ;;  %v635_v43 = vld [vmem:[#allocation10 + $0x10] sm:$0xff]  }
  0x3e   :  { %559 = vmatprep.subr.bf16.mxu0 %v756_v0  ;;  %v97_v22 = vsel %vm84_vm2, %v92_v17, %v83_v20  ;;  %v98_v23 = vsel %vm84_vm2, %v96_v18, %v82_v19  ;;  %v636_v44 = vld [vmem:[#allocation10 + $0x18] sm:$0xff]   ;;  %v637_v45 = vld [vmem:[#allocation10 + $0x20] sm:$0xff]   ;;  %v638_v46 = vld [vmem:[#allocation10 + $0x28] sm:$0xff]  }
  0x3f   :  { %v99_v25 = vsub.f32 %v97_v22, %v870_v10  ;;  %v100_v26 = vsub.f32 %v98_v23, %v872_v11  ;;  %v497_v47 = vld [vmem:[%s927_s3] ss:$0 sm:$0xff]  ;;  %v639_v50 = vld [vmem:[#allocation10 + $0x30] sm:$0xff]   ;;  %v640_v53 = vld [vmem:[#allocation10 + $0x38] sm:$0xff]   ;;  %s758_s3 = smov [#allocation11]  }
  0x40   :  { %578 = vmatpush3.bf16.msra.mxu1 %v642_v29  ;;  %v647_v55 = vld [vmem:[#allocation8 + $0x30] sm:$0xff]   ;;  %v648_v56 = vld [vmem:[#allocation8 + $0x38] sm:$0xff]   ;;  %s483_s20 = sshll.u32 %s758_s3, 4  ;;  %s484_s20 = int_to_ptr.vmem [resolvable:$true] %s483_s20 }
  0x41   :  { %560 = vmatpush3.bf16.msra.mxu0 %v627_v5  ;;  %v108_v30 = vmul.f32 %v496_v27, %v99_v25  ;;  %v109_v31 = vmul.f32 %v496_v27, %v100_v26  ;;  %579 = vmatprep.subr.bf16.mxu1 %v756_v0  ;;  %v121_v48 = vmul.f32 %v497_v47, %v99_v25  ;;  %s723_s21 = scalar_lea.vmem %s484_s20, 256  ;;  %p728_p11 = scmp.lt.s32.totalorder %s484_s20, %s484_s20 }
  0x42   :  { %561 = vmatprep.subr.bf16.mxu0 %v756_v0  ;;  %v122_v49 = vmul.f32 %v497_v47, %v100_v26  ;;  %p724_p10 = scmp.ne.s32.totalorder %s484_s20, %s723_s21  ;;  %p729_p12 = scmp.lt.s32.totalorder %s723_s21, %s723_s21 }
  0x43   :  { %v110_v34 = vadd.f32 %v870_v10, %v108_v30  ;;  %v111_v35 = vadd.f32 %v872_v11, %v109_v31  ;;  %v123_v51 = vadd.f32 %v870_v10, %v121_v48 }
  0x44   :  { %580 = vmatpush3.bf16.msra.mxu1 %v643_v33  ;;  %v124_v52 = vadd.f32 %v872_v11, %v122_v49  ;;  %p730_p13 = por %p729_p12, %p728_p11 }
  0x45   :  { %562 = vmatpush3.bf16.msra.mxu0 %v628_v14  ;;  %v112_v38 = vpack.c.bf16 %v111_v35, %v110_v34  ;;  %581 = vmatprep.subr.bf16.mxu1 %v756_v0 }
  0x46   :  { %563 = vmatprep.subr.bf16.mxu0 %v756_v0  ;;  %v125_v54 = vpack.c.bf16 %v124_v52, %v123_v51  ;;  %p731_p0 = pnand %p730_p13, %p724_p10 }
  0x48   :  { %582 = vmatpush3.bf16.msra.mxu1 %v644_v37 }
  0x49   :  { %564 = vmatpush3.bf16.msra.mxu0 %v629_v21  ;;  %583 = vmatprep.subr.bf16.mxu1 %v756_v0 }
  0x4a   :  { %565 = vmatprep.subr.bf16.mxu0 %v756_v0 }
  0x4c   :  { %584 = vmatpush3.bf16.msra.mxu1 %v645_v40 }
  0x4d   :  { %566 = vmatpush3.bf16.msra.mxu0 %v630_v24  ;;  %585 = vmatprep.subr.bf16.mxu1 %v756_v0 }
  0x4e   :  { %567 = vmatprep.subr.bf16.mxu0 %v756_v0 }
  0x50   :  { %586 = vmatpush3.bf16.msra.mxu1 %v646_v42 }
  0x51   :  { %568 = vmatpush3.bf16.msra.mxu0 %v631_v32  ;;  %587 = vmatprep.subr.bf16.mxu1 %v756_v0 }
  0x52   :  { %569 = vmatprep.subr.bf16.mxu0 %v756_v0 }
  0x54   :  { %588 = vmatpush3.bf16.msra.mxu1 %v647_v55 }
  0x55   :  { %570 = vmatpush3.bf16.msra.mxu0 %v632_v36  ;;  %589 = vmatprep.subr.bf16.mxu1 %v756_v0 }
  0x56   :  { %595 = vmatprep.subr.bf16.mxu0 %v756_v0 }
  0x58   :  { %572 = vmatmul.mubr.bf16.vlgmr.msra.gmra.mrb[0].mxu0 %v112_v38  ;;  %590 = vmatpush3.bf16.msra.mxu1 %v648_v56 }
  0x59   :  { %596 = vmatpush3.bf16.msra.mxu0 %v633_v39  ;;  %611 = vmatprep.mubr.msk.bf16.mxu0 %vm757_vm0, %v756_v0 }
  0x5a   :  { %597 = vmatprep.subr.bf16.mxu0 %v756_v0 }
  0x5d   :  { %598 = vmatpush3.bf16.msra.mxu0 %v634_v41 }
  0x5e   :  { %599 = vmatprep.subr.bf16.mxu0 %v756_v0 }
  0x61   :  { %600 = vmatpush3.bf16.msra.mxu0 %v635_v43 }
  0x62   :  { %601 = vmatprep.subr.bf16.mxu0 %v756_v0 }
  0x65   :  { %602 = vmatpush3.bf16.msra.mxu0 %v636_v44 }
  0x66   :  { %603 = vmatprep.subr.bf16.mxu0 %v756_v0 }
  0x69   :  { %604 = vmatpush3.bf16.msra.mxu0 %v637_v45 }
  0x6a   :  { %605 = vmatprep.subr.bf16.mxu0 %v756_v0 }
  0x6d   :  { %606 = vmatpush3.bf16.msra.mxu0 %v638_v46 }
  0x6e   :  { %607 = vmatprep.subr.bf16.mxu0 %v756_v0 }
  0x71   :  { %608 = vmatpush3.bf16.msra.mxu0 %v639_v50 }
  0x72   :  { %609 = vmatprep.subr.bf16.mxu0 %v756_v0 }
  0x75   :  { %610 = vmatpush3.bf16.msra.mxu0 %v640_v53 }
  0x78   :  { %612 = vmatmul.mubr.bf16.vlgmr.msra.gmra.mrb[4].mxu0 %v125_v54 }
 0x12b   :  { %v228_v57 = vpop.f32.mrb[0].mxu0 }
 0x12c   :  { %v235_v58 = vmax.f32 %v228_v57, 0.0  ;;  %v573_v59 = vpop.f32.mrb[1].mxu0 }
 0x12d   :  { %v231_v60 = vpop.f32.mrb[2].mxu0 }
 0x12e   :  { %v236_v61 = vmax.f32 %v231_v60, 0.0  ;;  %v574_v62 = vpop.f32.mrb[3].mxu0  ;;  %v237_v63 = vmul.f32 %v235_v58, %v235_v58 }
 0x130   :  { %v238_v1 = vmul.f32 %v236_v61, %v236_v61 }
 0x132   :  { %v241_v2 = vpack.c.bf16 %v238_v1, %v237_v63 }
 0x134   :  { %592 = vmatmul.mubr.bf16.vlgmr.msra.gmra.mrb[0].mxu1 %v241_v2 }
 0x14b   :  { %v453_v3 = vpop.f32.mrb[4].mxu0 }
 0x14c   :  { %v613_v4 = vpop.f32.mrb[5].mxu0  ;;  %v522_v7 = vmul.f32 -1.442695, %v453_v3 }
 0x14d   :  { %v456_v5 = vpop.f32.mrb[6].mxu0 }
 0x14e   :  { %v614_v6 = vpop.f32.mrb[7].mxu0  ;;  %649 = vpow2.f32 %v522_v7  ;;  %v523_v8 = vmul.f32 -1.442695, %v456_v5 }
 0x150   :  { %651 = vpow2.f32 %v523_v8 }
 0x158   :  { %v650_v0 = vpop.eup %649 }
 0x159   :  { %v466_v9 = vadd.f32 1.0, %v650_v0 }
 0x15a   :  { %v652_v10 = vpop.eup %651 }
 0x15b   :  { %653 = vrcp.f32 %v466_v9  ;;  %v467_v11 = vadd.f32 1.0, %v652_v10 }
 0x15d   :  { %655 = vrcp.f32 %v467_v11 }
 0x165   :  { %v654_v12 = vpop.eup %653 }
 0x167   :  { %v656_v16 = vpop.eup %655 }
 0x207   :  { %v340_v13 = vpop.f32.mrb[0].mxu1 }
 0x208   :  { %v474_v14 = vmul.f32 %v654_v12, %v340_v13  ;;  %v593_v15 = vpop.f32.mrb[1].mxu1 }
 0x209   :  { %v343_v17 = vpop.f32.mrb[2].mxu1 }
 0x20a   :  { %476 = vst [vmem:[#allocation11] sm:$0xff] %v474_v14  ;;  %v475_v18 = vmul.f32 %v656_v16, %v343_v17  ;;  %v594_v19 = vpop.f32.mrb[3].mxu1 }
 0x20c   :  { %477 = vst [vmem:[#allocation11 + $0x8] sm:$0xff] %v475_v18 }
 0x20d   :  { %734 = shalt.err (!%p731_p0)
}
 0x20e   :  { %s735_s24 = scalar_lea.hbm %s931_s7, 256 }
 0x20f   :  { %p736_p1 = scmp.ne.s32.totalorder %s931_s7, %s735_s24  ;;  %p739_p2 = scmp.lt.u32.totalorder %s735_s24, %s931_s7 }
 0x211   :  { %p741_p3 = pnand %p739_p2, %p736_p1 }
 0x213   :  { %744 = shalt.err (!%p741_p3)
}
 0x214   :  { %s759_s29 = smov 128   ;;  %s760_s30 = smov 8  }
 0x215   :  { %489 = dma.vmem_to_hbm [thread:$0]  %s484_s20, 256, %s931_s7, [#allocation7], %s759_s29, %s759_s29, %s760_s30  }
 0x216   :  { %749 = dma.done.wait [#allocation7], 256  }
 0x217   :  { %750 = vsyncadd [#allocation7], 4294967040 }
 0x218   :  { %493 = vsyncpa [#allocation6], 1 }
 0x219   :  { %494 = vsyncpa [#allocation9], 1 }
 0x21a   :  { %495 = vsyncpa [#allocation7], 1 }

// kernel: cmix_x060_forward.1
= control target key start
LH: loop header
LB: loop body
LE: loop exit
PB: predicated region body
PF: predicated region fallthrough
CT: control target
= control target key end

     0   :  { %12 = vsyncpa [#allocation6], 0  ;;  %s924_s0 = inlined_call_operand.vmem [shape: bf16[2,8,128], index: 0, kind: input, shape index: {}]   ;;  %s925_s1 = inlined_call_operand.vmem [shape: bf16[1,2,1,128], index: 1, kind: input, shape index: {}]   ;;  %s926_s2 = inlined_call_operand.vmem [shape: f32[1,128], index: 2, kind: input, shape index: {}]   ;;  %s927_s3 = inlined_call_operand.vmem [shape: f32[1,128], index: 3, kind: input, shape index: {}]   ;;  %s928_s4 = inlined_call_operand.hbm [shape: bf16[128,128], index: 4, kind: input, shape index: {}]   ;;  %s929_s5 = inlined_call_operand.hbm [shape: bf16[128,128], index: 5, kind: input, shape index: {}]   ;;  %s930_s6 = inlined_call_operand.hbm [shape: bf16[128,128], index: 6, kind: input, shape index: {}]   ;;  %s931_s7 = inlined_call_operand.hbm [shape: f32[2,8,128], index: 7, kind: output, shape index: {}]  }
   0x1   :  { %13 = vsyncpa [#allocation9], 0 }
   0x2   :  { %14 = vsyncpa [#allocation7], 0  ;;  %s751_s24 = smov [#allocation8]   ;;  %s752_s26 = smov [#allocation5]  }
   0x3   :  { %s40_s25 = sshll.u32 %s751_s24, 4  ;;  %s28_s27 = sshll.u32 %s752_s26, 4  ;;  %s41_s25 = int_to_ptr.vmem [resolvable:$true] %s40_s25  ;;  %s801_s27 = int_to_ptr.vmem [resolvable:$true] %s28_s27 }
   0x4   :  { %s657_s30 = scalar_lea.hbm %s929_s5, 1024 }
   0x5   :  { %p658_p0 = scmp.ne.s32.totalorder %s929_s5, %s657_s30  ;;  %p661_p1 = scmp.lt.u32.totalorder %s657_s30, %s929_s5 }
   0x7   :  { %p663_p2 = pnand %p661_p1, %p658_p0 }
   0x9   :  { %666 = shalt.err (!%p663_p2)
}
   0xa   :  { %s667_s12 = scalar_lea.vmem %s41_s25, 1024  ;;  %p672_p4 = scmp.lt.s32.totalorder %s41_s25, %s41_s25 }
   0xb   :  { %p668_p3 = scmp.ne.s32.totalorder %s41_s25, %s667_s12  ;;  %p673_p5 = scmp.lt.s32.totalorder %s667_s12, %s667_s12 }
   0xd   :  { %p674_p6 = por %p673_p5, %p672_p4 }
   0xf   :  { %p675_p7 = pnand %p674_p6, %p668_p3 }
  0x11   :  { %678 = shalt.err (!%p675_p7)
}
  0x12   :  { %s753_s13 = smov 64   ;;  %s754_s14 = smov 4  }
  0x13   :  { %46 = dma.hbm_to_vmem [thread:$0]  %s929_s5, 1024, %s41_s25, [#allocation9], %s753_s13, %s753_s13, %s754_s14  }
  0x14   :  { %s679_s19 = scalar_lea.hbm %s928_s4, 1024 }
  0x15   :  { %p680_p8 = scmp.ne.s32.totalorder %s928_s4, %s679_s19  ;;  %p683_p9 = scmp.lt.u32.totalorder %s679_s19, %s928_s4 }
  0x17   :  { %p685_p10 = pnand %p683_p9, %p680_p8 }
  0x19   :  { %688 = shalt.err (!%p685_p10)
}
  0x1a   :  { %s689_s24 = scalar_lea.vmem %s801_s27, 1024  ;;  %p694_p12 = scmp.lt.s32.totalorder %s801_s27, %s801_s27 }
  0x1b   :  { %p690_p11 = scmp.ne.s32.totalorder %s801_s27, %s689_s24  ;;  %p695_p13 = scmp.lt.s32.totalorder %s689_s24, %s689_s24 }
  0x1d   :  { %p696_p0 = por %p695_p13, %p694_p12 }
  0x1f   :  { %p697_p1 = pnand %p696_p0, %p690_p11 }
  0x21   :  { %700 = shalt.err (!%p697_p1)
}
  0x22   :  { %34 = dma.hbm_to_vmem [thread:$0]  %s928_s4, 1024, %s801_s27, [#allocation6], %s753_s13, %s753_s13, %s754_s14  }
  0x23   :  { %s755_s26 = smov [#allocation10]   ;;  %s701_s8 = scalar_lea.hbm %s930_s6, 1024 }
  0x24   :  { %s52_s28 = sshll.u32 %s755_s26, 4  ;;  %p702_p2 = scmp.ne.s32.totalorder %s930_s6, %s701_s8  ;;  %s53_s28 = int_to_ptr.vmem [resolvable:$true] %s52_s28 }
  0x25   :  { %p705_p3 = scmp.lt.u32.totalorder %s701_s8, %s930_s6 }
  0x27   :  { %p707_p4 = pnand %p705_p3, %p702_p2 }
  0x29   :  { %710 = shalt.err (!%p707_p4)
}
  0x2a   :  { %s711_s15 = scalar_lea.vmem %s53_s28, 1024  ;;  %p716_p6 = scmp.lt.s32.totalorder %s53_s28, %s53_s28 }
  0x2b   :  { %p712_p5 = scmp.ne.s32.totalorder %s53_s28, %s711_s15  ;;  %p717_p7 = scmp.lt.s32.totalorder %s711_s15, %s711_s15 }
  0x2d   :  { %p718_p8 = por %p717_p7, %p716_p6 }
  0x2f   :  { %p719_p9 = pnand %p718_p8, %p712_p5 }
  0x31   :  { %722 = shalt.err (!%p719_p9)
}
  0x32   :  { %58 = dma.hbm_to_vmem [thread:$0]  %s930_s6, 1024, %s53_s28, [#allocation9], %s753_s13, %s753_s13, %s754_s14  }
  0x33   :  { %745 = dma.done.wait [#allocation6], 1024  }
  0x34   :  { %746 = vsyncadd [#allocation6], 4294966272 }
  0x35   :  { %747 = dma.done.wait [#allocation9], 2048  }
  0x36   :  { %748 = vsyncadd [#allocation9], 4294965248  ;;  %v756_v0 = vmov 0.0   ;;  %vm757_vm0 = vmmov 0   ;;  %v79_v1 = vlaneseq  ;;  %v625_v2 = vld [vmem:[#allocation5] sm:$0xff]   ;;  %v626_v3 = vld [vmem:[#allocation5 + $0x8] sm:$0xff]  }
  0x37   :  { %555 = vmatprep.subr.bf16.mxu0 %v756_v0  ;;  %571 = vmatprep.mubr.msk.bf16.mxu0 %vm757_vm0, %v756_v0  ;;  %v627_v5 = vld [vmem:[#allocation5 + $0x10] sm:$0xff]   ;;  %v525_v7 = vld [vmem:[%s924_s0] sm:$0xff]   ;;  %v628_v14 = vld [vmem:[#allocation5 + $0x18] sm:$0xff]  }
  0x38   :  { %575 = vmatprep.subr.bf16.mxu1 %v756_v0  ;;  %591 = vmatprep.mubr.msk.bf16.mxu1 %vm757_vm0, %v756_v0  ;;  %v80_v4 = vshrl.u32 %v79_v1, 7  ;;  %v85_v8 = vld [vmem:[%s925_s1] sm:$0x1]  ;;  %v86_v9 = vld [vmem:[%s925_s1 + $0x1] sm:$0x1]  ;;  %v870_v10 = vunpack.c.l.bf16 %v525_v7  ;;  %v872_v11 = vunpack.c.h.bf16 %v525_v7  ;;  %v630_v24 = vld [vmem:[#allocation5 + $0x28] sm:$0xff]  }
  0x39   :  { %556 = vmatpush3.bf16.msra.mxu0 %v625_v2  ;;  %v87_v12 = vunpack.c.l.bf16 %v85_v8  ;;  %v88_v13 = vunpack.c.l.bf16 %v86_v9  ;;  %v629_v21 = vld [vmem:[#allocation5 + $0x20] sm:$0xff]   ;;  %v642_v29 = vld [vmem:[#allocation8 + $0x8] sm:$0xff]   ;;  %v631_v32 = vld [vmem:[#allocation5 + $0x30] sm:$0xff]  }
  0x3a   :  { %557 = vmatprep.subr.bf16.mxu0 %v756_v0  ;;  %v91_v6 = vsub.s32 0, %v80_v4  ;;  %vm81_vm1 = vcmp.lt.s32.totalorder %v80_v4, 1  ;;  %vm84_vm2 = vcmp.eq.s32.totalorder %v80_v4, 0  ;;  %v77_v15 = vrot.slane %v870_v10, 7  ;;  %v496_v27 = vld [vmem:[%s926_s2] ss:$0 sm:$0xff] }
  0x3b   :  { %v78_v16 = vrot.slane %v872_v11, 7  ;;  %v641_v28 = vld [vmem:[#allocation8] sm:$0xff]   ;;  %v643_v33 = vld [vmem:[#allocation8 + $0x10] sm:$0xff]   ;;  %v632_v36 = vld [vmem:[#allocation5 + $0x38] sm:$0xff]  }
  0x3c   :  { %v92_v17 = vrot.slane %v87_v12, %v91_v6  ;;  %v96_v18 = vrot.slane %v88_v13, %v91_v6  ;;  %576 = vmatpush3.bf16.msra.mxu1 %v641_v28  ;;  %v644_v37 = vld [vmem:[#allocation8 + $0x18] sm:$0xff]   ;;  %v633_v39 = vld [vmem:[#allocation10] sm:$0xff]   ;;  %v634_v41 = vld [vmem:[#allocation10 + $0x8] sm:$0xff]  }
  0x3d   :  { %558 = vmatpush3.bf16.msra.mxu0 %v626_v3  ;;  %v82_v19 = vsel %vm81_vm1, %v77_v15, %v78_v16  ;;  %v83_v20 = vsel %vm81_vm1, %v78_v16, %v77_v15  ;;  %577 = vmatprep.subr.bf16.mxu1 %v756_v0  ;;  %v645_v40 = vld [vmem:[#allocation8 + $0x20] sm:$0xff]   ;;  %v646_v42 = vld [vmem:[#allocation8 + $0x28] sm:$0xff]   ;;  %v635_v43 = vld [vmem:[#allocation10 + $0x10] sm:$0xff]  }
  0x3e   :  { %559 = vmatprep.subr.bf16.mxu0 %v756_v0  ;;  %v97_v22 = vsel %vm84_vm2, %v92_v17, %v83_v20  ;;  %v98_v23 = vsel %vm84_vm2, %v96_v18, %v82_v19  ;;  %v636_v44 = vld [vmem:[#allocation10 + $0x18] sm:$0xff]   ;;  %v637_v45 = vld [vmem:[#allocation10 + $0x20] sm:$0xff]   ;;  %v638_v46 = vld [vmem:[#allocation10 + $0x28] sm:$0xff]  }
  0x3f   :  { %v99_v25 = vsub.f32 %v97_v22, %v870_v10  ;;  %v100_v26 = vsub.f32 %v98_v23, %v872_v11  ;;  %v497_v47 = vld [vmem:[%s927_s3] ss:$0 sm:$0xff]  ;;  %v639_v50 = vld [vmem:[#allocation10 + $0x30] sm:$0xff]   ;;  %v640_v53 = vld [vmem:[#allocation10 + $0x38] sm:$0xff]   ;;  %s758_s3 = smov [#allocation11]  }
  0x40   :  { %578 = vmatpush3.bf16.msra.mxu1 %v642_v29  ;;  %v647_v55 = vld [vmem:[#allocation8 + $0x30] sm:$0xff]   ;;  %v648_v56 = vld [vmem:[#allocation8 + $0x38] sm:$0xff]   ;;  %s483_s20 = sshll.u32 %s758_s3, 4  ;;  %s484_s20 = int_to_ptr.vmem [resolvable:$true] %s483_s20 }
  0x41   :  { %560 = vmatpush3.bf16.msra.mxu0 %v627_v5  ;;  %v108_v30 = vmul.f32 %v496_v27, %v99_v25  ;;  %v109_v31 = vmul.f32 %v496_v27, %v100_v26  ;;  %579 = vmatprep.subr.bf16.mxu1 %v756_v0  ;;  %v121_v48 = vmul.f32 %v497_v47, %v99_v25  ;;  %s723_s21 = scalar_lea.vmem %s484_s20, 256  ;;  %p728_p11 = scmp.lt.s32.totalorder %s484_s20, %s484_s20 }
  0x42   :  { %561 = vmatprep.subr.bf16.mxu0 %v756_v0  ;;  %v122_v49 = vmul.f32 %v497_v47, %v100_v26  ;;  %p724_p10 = scmp.ne.s32.totalorder %s484_s20, %s723_s21  ;;  %p729_p12 = scmp.lt.s32.totalorder %s723_s21, %s723_s21 }
  0x43   :  { %v110_v34 = vadd.f32 %v870_v10, %v108_v30  ;;  %v111_v35 = vadd.f32 %v872_v11, %v109_v31  ;;  %v123_v51 = vadd.f32 %v870_v10, %v121_v48 }
  0x44   :  { %580 = vmatpush3.bf16.msra.mxu1 %v643_v33  ;;  %v124_v52 = vadd.f32 %v872_v11, %v122_v49  ;;  %p730_p13 = por %p729_p12, %p728_p11 }
  0x45   :  { %562 = vmatpush3.bf16.msra.mxu0 %v628_v14  ;;  %v112_v38 = vpack.c.bf16 %v111_v35, %v110_v34  ;;  %581 = vmatprep.subr.bf16.mxu1 %v756_v0 }
  0x46   :  { %563 = vmatprep.subr.bf16.mxu0 %v756_v0  ;;  %v125_v54 = vpack.c.bf16 %v124_v52, %v123_v51  ;;  %p731_p0 = pnand %p730_p13, %p724_p10 }
  0x48   :  { %582 = vmatpush3.bf16.msra.mxu1 %v644_v37 }
  0x49   :  { %564 = vmatpush3.bf16.msra.mxu0 %v629_v21  ;;  %583 = vmatprep.subr.bf16.mxu1 %v756_v0 }
  0x4a   :  { %565 = vmatprep.subr.bf16.mxu0 %v756_v0 }
  0x4c   :  { %584 = vmatpush3.bf16.msra.mxu1 %v645_v40 }
  0x4d   :  { %566 = vmatpush3.bf16.msra.mxu0 %v630_v24  ;;  %585 = vmatprep.subr.bf16.mxu1 %v756_v0 }
  0x4e   :  { %567 = vmatprep.subr.bf16.mxu0 %v756_v0 }
  0x50   :  { %586 = vmatpush3.bf16.msra.mxu1 %v646_v42 }
  0x51   :  { %568 = vmatpush3.bf16.msra.mxu0 %v631_v32  ;;  %587 = vmatprep.subr.bf16.mxu1 %v756_v0 }
  0x52   :  { %569 = vmatprep.subr.bf16.mxu0 %v756_v0 }
  0x54   :  { %588 = vmatpush3.bf16.msra.mxu1 %v647_v55 }
  0x55   :  { %570 = vmatpush3.bf16.msra.mxu0 %v632_v36  ;;  %589 = vmatprep.subr.bf16.mxu1 %v756_v0 }
  0x56   :  { %595 = vmatprep.subr.bf16.mxu0 %v756_v0 }
  0x58   :  { %572 = vmatmul.mubr.bf16.vlgmr.msra.gmra.mrb[0].mxu0 %v112_v38  ;;  %590 = vmatpush3.bf16.msra.mxu1 %v648_v56 }
  0x59   :  { %596 = vmatpush3.bf16.msra.mxu0 %v633_v39  ;;  %611 = vmatprep.mubr.msk.bf16.mxu0 %vm757_vm0, %v756_v0 }
  0x5a   :  { %597 = vmatprep.subr.bf16.mxu0 %v756_v0 }
  0x5d   :  { %598 = vmatpush3.bf16.msra.mxu0 %v634_v41 }
  0x5e   :  { %599 = vmatprep.subr.bf16.mxu0 %v756_v0 }
  0x61   :  { %600 = vmatpush3.bf16.msra.mxu0 %v635_v43 }
  0x62   :  { %601 = vmatprep.subr.bf16.mxu0 %v756_v0 }
  0x65   :  { %602 = vmatpush3.bf16.msra.mxu0 %v636_v44 }
  0x66   :  { %603 = vmatprep.subr.bf16.mxu0 %v756_v0 }
  0x69   :  { %604 = vmatpush3.bf16.msra.mxu0 %v637_v45 }
  0x6a   :  { %605 = vmatprep.subr.bf16.mxu0 %v756_v0 }
  0x6d   :  { %606 = vmatpush3.bf16.msra.mxu0 %v638_v46 }
  0x6e   :  { %607 = vmatprep.subr.bf16.mxu0 %v756_v0 }
  0x71   :  { %608 = vmatpush3.bf16.msra.mxu0 %v639_v50 }
  0x72   :  { %609 = vmatprep.subr.bf16.mxu0 %v756_v0 }
  0x75   :  { %610 = vmatpush3.bf16.msra.mxu0 %v640_v53 }
  0x78   :  { %612 = vmatmul.mubr.bf16.vlgmr.msra.gmra.mrb[4].mxu0 %v125_v54 }
 0x12b   :  { %v228_v57 = vpop.f32.mrb[0].mxu0 }
 0x12c   :  { %v235_v58 = vmax.f32 %v228_v57, 0.0  ;;  %v573_v59 = vpop.f32.mrb[1].mxu0 }
 0x12d   :  { %v231_v60 = vpop.f32.mrb[2].mxu0 }
 0x12e   :  { %v236_v61 = vmax.f32 %v231_v60, 0.0  ;;  %v574_v62 = vpop.f32.mrb[3].mxu0  ;;  %v237_v63 = vmul.f32 %v235_v58, %v235_v58 }
 0x130   :  { %v238_v1 = vmul.f32 %v236_v61, %v236_v61 }
 0x132   :  { %v241_v2 = vpack.c.bf16 %v238_v1, %v237_v63 }
 0x134   :  { %592 = vmatmul.mubr.bf16.vlgmr.msra.gmra.mrb[0].mxu1 %v241_v2 }
 0x14b   :  { %v453_v3 = vpop.f32.mrb[4].mxu0 }
 0x14c   :  { %v613_v4 = vpop.f32.mrb[5].mxu0  ;;  %v522_v7 = vmul.f32 -1.442695, %v453_v3 }
 0x14d   :  { %v456_v5 = vpop.f32.mrb[6].mxu0 }
 0x14e   :  { %v614_v6 = vpop.f32.mrb[7].mxu0  ;;  %649 = vpow2.f32 %v522_v7  ;;  %v523_v8 = vmul.f32 -1.442695, %v456_v5 }
 0x150   :  { %651 = vpow2.f32 %v523_v8 }
 0x158   :  { %v650_v0 = vpop.eup %649 }
 0x159   :  { %v466_v9 = vadd.f32 1.0, %v650_v0 }
 0x15a   :  { %v652_v10 = vpop.eup %651 }
 0x15b   :  { %653 = vrcp.f32 %v466_v9  ;;  %v467_v11 = vadd.f32 1.0, %v652_v10 }
 0x15d   :  { %655 = vrcp.f32 %v467_v11 }
 0x165   :  { %v654_v12 = vpop.eup %653 }
 0x167   :  { %v656_v16 = vpop.eup %655 }
 0x207   :  { %v340_v13 = vpop.f32.mrb[0].mxu1 }
 0x208   :  { %v474_v14 = vmul.f32 %v654_v12, %v340_v13  ;;  %v593_v15 = vpop.f32.mrb[1].mxu1 }
 0x209   :  { %v343_v17 = vpop.f32.mrb[2].mxu1 }
 0x20a   :  { %476 = vst [vmem:[#allocation11] sm:$0xff] %v474_v14  ;;  %v475_v18 = vmul.f32 %v656_v16, %v343_v17  ;;  %v594_v19 = vpop.f32.mrb[3].mxu1 }
 0x20c   :  { %477 = vst [vmem:[#allocation11 + $0x8] sm:$0xff] %v475_v18 }
 0x20d   :  { %734 = shalt.err (!%p731_p0)
}
 0x20e   :  { %s735_s24 = scalar_lea.hbm %s931_s7, 256 }
 0x20f   :  { %p736_p1 = scmp.ne.s32.totalorder %s931_s7, %s735_s24  ;;  %p739_p2 = scmp.lt.u32.totalorder %s735_s24, %s931_s7 }
 0x211   :  { %p741_p3 = pnand %p739_p2, %p736_p1 }
 0x213   :  { %744 = shalt.err (!%p741_p3)
}
 0x214   :  { %s759_s29 = smov 128   ;;  %s760_s30 = smov 8  }
 0x215   :  { %489 = dma.vmem_to_hbm [thread:$0]  %s484_s20, 256, %s931_s7, [#allocation7], %s759_s29, %s759_s29, %s760_s30  }
 0x216   :  { %749 = dma.done.wait [#allocation7], 256  }
 0x217   :  { %750 = vsyncadd [#allocation7], 4294967040 }
 0x218   :  { %493 = vsyncpa [#allocation6], 1 }
 0x219   :  { %494 = vsyncpa [#allocation9], 1 }
 0x21a   :  { %495 = vsyncpa [#allocation7], 1 }

</bundles_post_ra>
